<compile_context>
chip_gen: v7x
topology: tpu7x:2x2x1
jax: 0.10.0
libtpu: 0.0.40
codegen_flags: <defaults>
</compile_context>

<pallas_src>
import functools

import jax
import jax.numpy as jnp
from jax.experimental import pallas as pl
from jax.experimental.pallas import tpu as pltpu

_MIB = 1024 * 1024


# ---------------------------------------------------------------------------
# Fused single-pass kernel: block = (nb, C, HW); one HBM read + one HBM write.
# ---------------------------------------------------------------------------
def _fused_kernel(x_ref, w1_ref, b1_ref, w2_ref, b2_ref, o_ref, *, inv_hw):
    x = x_ref[...]                                              # (nb, C, HW)
    xf = x.astype(jnp.float32)
    y = jnp.sum(xf, axis=2, keepdims=True) * inv_hw             # (nb, C, 1) mean
    # grouped conv1 (C -> mid):  h[b, m] = sum_c y[b, c] * w1[c, m] + b1[m]
    w1 = w1_ref[...].astype(jnp.float32)                        # (C, mid)
    h = jnp.sum(w1[None, :, :] * y, axis=1, keepdims=True) + b1_ref[...][None, :, :]
    h = jnp.maximum(h, 0.0)                                     # (nb, 1, mid)
    # grouped conv2 (mid -> C):  z[b, c] = sum_m h[b, m] * w2[c, m] + b2[c]
    w2 = w2_ref[...].astype(jnp.float32)                        # (C, mid)
    z = jnp.sum(w2[None, :, :] * h, axis=2, keepdims=True) + b2_ref[...][None, :, :]
    s = jax.nn.sigmoid(z)                                       # (nb, C, 1)
    o_ref[...] = (xf * s).astype(o_ref.dtype)


# ---------------------------------------------------------------------------
# Fallback pass 1: per-(N, C) sigmoid scale, HW tiled with cdiv + tail mask.
# ---------------------------------------------------------------------------
def _scale_kernel(x_ref, w1_ref, b1_ref, w2_ref, b2_ref, s_ref, acc_ref, *,
                  inv_hw, hw, tile_hw):
    t = pl.program_id(1)

    @pl.when(t == 0)
    def _():
        acc_ref[...] = jnp.zeros_like(acc_ref)

    x = x_ref[...].astype(jnp.float32)                          # (C, tile_hw)
    # Mask the padded tail of the last tile (OOB input contents are undefined).
    col = jax.lax.broadcasted_iota(jnp.int32, x.shape, 1) + t * tile_hw
    x = jnp.where(col < hw, x, 0.0)

    # Lane-aligned VPU folds into a (C, 128) accumulator (no per-tile XLU
    # cross-lane reduce); tile_hw is a static multiple of 128.
    acc = acc_ref[...]
    for j in range(tile_hw // 128):
        acc = acc + x[:, j * 128:(j + 1) * 128]
    acc_ref[...] = acc

    @pl.when(t == pl.num_programs(1) - 1)
    def _():
        y = jnp.sum(acc_ref[...], axis=1, keepdims=True) * inv_hw          # (C, 1)
        h = jnp.sum(w1_ref[...] * y, axis=0, keepdims=True) + b1_ref[...]  # (1, mid)
        h = jnp.maximum(h, 0.0)
        z = jnp.sum(w2_ref[...] * h, axis=1, keepdims=True) + b2_ref[...]  # (C, 1)
        s_ref[...] = jax.nn.sigmoid(z).astype(s_ref.dtype)


# ---------------------------------------------------------------------------
# Fallback pass 2: out = x * s, fully parallel grid, lane-dense stores.
# ---------------------------------------------------------------------------
def _apply_kernel(x_ref, s_ref, o_ref):
    x = x_ref[...]                                              # (C, tile_hw)
    s = s_ref[...].astype(x.dtype)                              # (C, 1)
    o_ref[...] = (x * s).astype(o_ref.dtype)


# ---------------------------------------------------------------------------
# Planning helpers (generation-aware VMEM budget).
# ---------------------------------------------------------------------------
def _tpu_vmem_capacity():
    try:
        info = pltpu.get_tpu_info()
        for attr in ("vmem_capacity_bytes", "vmem_bytes"):
            cap = getattr(info, attr, None)
            if cap:
                return int(cap)
    except Exception:
        pass
    return 64 * _MIB  # conservative default: v7x physical per-TensorCore VMEM


def _mosaic_params(semantics, needed_bytes, cap):
    vmem_limit = None
    # Raise the scoped-VMEM limit only when the blocks exceed the smallest
    # default scoped limit (v5e: 16 MiB); never above ~3/4 of physical VMEM.
    if needed_bytes > 14 * _MIB:
        vmem_limit = int(min(cap * 3 // 4, needed_bytes + 8 * _MIB))
    return pltpu.CompilerParams(dimension_semantics=semantics,
                                vmem_limit_bytes=vmem_limit)


def attention_forward(x_nchw, params, *, max_block_bytes=None):
    """x_nchw: (N, C, H, W).  Returns x * SE_scale(x), same shape/dtype."""
    n, c, h, w = x_nchw.shape
    hw = h * w
    mid = params["w1"].shape[1]
    itemsize = jnp.dtype(x_nchw.dtype).itemsize

    cap = _tpu_vmem_capacity()
    if max_block_bytes is None:
        # 4 big blocks live at once (double-buffered input + output); keep the
        # total well inside physical VMEM on every generation.
        total = max(8 * _MIB, min(cap // 2, 48 * _MIB))
        max_block_bytes = total // 4

    # NCHW -> (N, C, HW) is a free reshape (no transpose); HW lands on lanes.
    x = x_nchw.reshape(n, c, hw)
    weight_bytes = 2 * (2 * c * mid + mid + c) * 4

    slab = c * hw * itemsize
    if slab <= max_block_bytes:
        # --------- fused single-pass path: 1 read + 1 write of x -----------
        nb = 1
        for d in range(1, n + 1):            # largest divisor of N within budget
            if n % d == 0 and d * slab <= max_block_bytes:
                nb = d
        needed = 4 * nb * slab + weight_bytes + _MIB
        out = pl.pallas_call(
            functools.partial(_fused_kernel, inv_hw=1.0 / hw),
            out_shape=jax.ShapeDtypeStruct((n, c, hw), x.dtype),
            grid_spec=pltpu.PrefetchScalarGridSpec(
                num_scalar_prefetch=0,
                grid=(n // nb,),
                in_specs=[
                    pl.BlockSpec((nb, c, hw), lambda i: (i, 0, 0)),   # x
                    pl.BlockSpec((c, mid), lambda i: (0, 0)),         # w1
                    pl.BlockSpec((1, mid), lambda i: (0, 0)),         # b1
                    pl.BlockSpec((c, mid), lambda i: (0, 0)),         # w2
                    pl.BlockSpec((c, 1), lambda i: (0, 0)),           # b2
                ],
                out_specs=pl.BlockSpec((nb, c, hw), lambda i: (i, 0, 0)),
            ),
            compiler_params=_mosaic_params(("parallel",), needed, cap),
        )(x, params["w1"], params["b1"], params["w2"], params["b2"])
        return out.reshape(n, c, h, w)

    # --------- fallback: per-batch slab too large -> tiled two-pass ---------
    tile_hw = (max_block_bytes // (c * itemsize)) // 128 * 128
    tile_hw = int(max(128, min(tile_hw, 2048, pl.cdiv(hw, 128) * 128)))
    num_t = pl.cdiv(hw, tile_hw)             # tile need NOT divide HW
    needed = 4 * c * tile_hw * itemsize + weight_bytes + _MIB

    s = pl.pallas_call(
        functools.partial(_scale_kernel, inv_hw=1.0 / hw, hw=hw, tile_hw=tile_hw),
        out_shape=jax.ShapeDtypeStruct((n, c, 1), jnp.float32),
        grid_spec=pltpu.PrefetchScalarGridSpec(
            num_scalar_prefetch=0,
            grid=(n, num_t),
            in_specs=[
                pl.BlockSpec((None, c, tile_hw), lambda b, t: (b, 0, t)),  # x
                pl.BlockSpec((c, mid), lambda b, t: (0, 0)),               # w1
                pl.BlockSpec((1, mid), lambda b, t: (0, 0)),               # b1
                pl.BlockSpec((c, mid), lambda b, t: (0, 0)),               # w2
                pl.BlockSpec((c, 1), lambda b, t: (0, 0)),                 # b2
            ],
            out_specs=pl.BlockSpec((None, c, 1), lambda b, t: (b, 0, 0)),
            scratch_shapes=[pltpu.VMEM((c, 128), jnp.float32)],
        ),
        compiler_params=_mosaic_params(("parallel", "arbitrary"), needed, cap),
    )(x, params["w1"], params["b1"], params["w2"], params["b2"])

    out = pl.pallas_call(
        _apply_kernel,
        out_shape=jax.ShapeDtypeStruct((n, c, hw), x.dtype),
        grid_spec=pltpu.PrefetchScalarGridSpec(
            num_scalar_prefetch=0,
            grid=(n, num_t),
            in_specs=[
                pl.BlockSpec((None, c, tile_hw), lambda b, t: (b, 0, t)),  # x
                pl.BlockSpec((None, c, 1), lambda b, t: (b, 0, 0)),        # s
            ],
            out_specs=pl.BlockSpec((None, c, tile_hw), lambda b, t: (b, 0, t)),
        ),
        compiler_params=_mosaic_params(("parallel", "parallel"), needed, cap),
    )(x, s)
    return out.reshape(n, c, h, w)


# ---------------------------------------------------------------------------
# Parameter construction (grouped 1x1 convs folded to block-diagonal dense).
# ---------------------------------------------------------------------------
def _block_diag(per_group):
    """per_group: (G, in_g, out_g) -> dense block-diagonal (G*in_g, G*out_g)."""
    g, ig, og = per_group.shape
    full = jnp.zeros((g * ig, g * og), jnp.float32)
    for gi in range(g):
        full = full.at[gi * ig:(gi + 1) * ig,
                       gi * og:(gi + 1) * og].set(per_group[gi])
    return full


def init_params(key, channel, mid, groups):
    assert channel % groups == 0 and mid % groups == 0
    cg, mg = channel // groups, mid // groups
    k1, k2, k3, k4 = jax.random.split(key, 4)

    w1_pg = (jax.random.normal(k1, (groups, cg, mg)) * 0.3).astype(jnp.float32)
    b1 = (jax.random.normal(k2, (mid,)) * 0.1).astype(jnp.float32)
    w2_pg = (jax.random.normal(k3, (groups, cg, mg)) * 0.3).astype(jnp.float32)
    b2 = (jax.random.normal(k4, (channel,)) * 0.1).astype(jnp.float32)

    return {
        "w1_pg": w1_pg, "w2_pg": w2_pg,           # kept for the reference check
        "w1": _block_diag(w1_pg),                 # (channel, mid)
        "b1": b1.reshape(1, mid),
        "w2": _block_diag(w2_pg),                 # (channel, mid)
        "b2": b2.reshape(channel, 1),
    }


def _reference(x_nchw, params, groups):
    """Pure-JAX reference using the per-group weights (validates grouping too)."""
    n, c, h, w = x_nchw.shape
    mid = params["w1"].shape[1]
    cg, mg = c // groups, mid // groups
    y = jnp.mean(x_nchw, axis=(2, 3))                             # (N, C)
    yg = y.reshape(n, groups, cg)
    h1 = jnp.einsum("ngc,gcm->ngm", yg, params["w1_pg"]).reshape(n, mid)
    h1 = jnp.maximum(h1 + params["b1"][0], 0.0)
    hg = h1.reshape(n, groups, mg)
    z = jnp.einsum("ngm,gcm->ngc", hg, params["w2_pg"]).reshape(n, c)
    z = z + params["b2"][:, 0]
    s = jax.nn.sigmoid(z)                                          # (N, C)
    return x_nchw * s[:, :, None, None]


if __name__ == "__main__":
    N, CHANNEL, MID, GROUPS = 2, 16, 8, 4
    H = W = 16  # HW = 256

    key = jax.random.PRNGKey(0)
    kx, kp = jax.random.split(key)
    x = jax.random.normal(kx, (N, CHANNEL, H, W), dtype=jnp.float32)
    params = init_params(kp, CHANNEL, MID, GROUPS)

    # Preferred fused single-pass path.
    out = jax.block_until_ready(attention_forward(x, params))
    ref = _reference(x, params, GROUPS)
    assert out.shape == x.shape
    assert jnp.allclose(out, ref, atol=1e-5, rtol=1e-5), "fused path mismatch"

    # Also exercise the tiled two-pass fallback (forced via a tiny block
    # budget) with HW that is NOT a multiple of 128, so the cdiv grid and the
    # masked-tail reduction are validated on hardware too.
    H2, W2 = 16, 21  # HW = 336 -> 3 tiles of 128, masked tail
    x2 = jax.random.normal(kx, (N, CHANNEL, H2, W2), dtype=jnp.float32)
    out2 = jax.block_until_ready(
        attention_forward(x2, params, max_block_bytes=8192))
    ref2 = _reference(x2, params, GROUPS)
    assert out2.shape == x2.shape
    assert jnp.allclose(out2, ref2, atol=1e-5, rtol=1e-5), "tiled path mismatch"

    print("KERNEL_OK")
</pallas_src>

<mosaic_0001>
module attributes {stable_mosaic.version = 11 : i64} {
  func.func @_fused_kernel(%arg0: i32, %arg1: memref<2x16x256xf32, #tpu.memory_space<vmem>>, %arg2: memref<16x8xf32, #tpu.memory_space<vmem>>, %arg3: memref<1x8xf32, #tpu.memory_space<vmem>>, %arg4: memref<16x8xf32, #tpu.memory_space<vmem>>, %arg5: memref<16x1xf32, #tpu.memory_space<vmem>>, %arg6: memref<2x16x256xf32, #tpu.memory_space<vmem>>) attributes {dimension_semantics = [#tpu.dimension_semantics<parallel>], iteration_bounds = array<i64: 1>, scalar_prefetch = 0 : i64, scratch_operands = 0 : i64, tpu.core_type = #tpu.core_type<tc>, window_params = [{transform_indices = @transform_0, window_bounds = array<i64: 2, 16, 256>}, {pipeline_mode = #tpu.pipeline_mode<synchronous>, transform_indices = @transform_1, window_bounds = array<i64: 16, 8>}, {pipeline_mode = #tpu.pipeline_mode<synchronous>, transform_indices = @transform_2, window_bounds = array<i64: 1, 8>}, {pipeline_mode = #tpu.pipeline_mode<synchronous>, transform_indices = @transform_3, window_bounds = array<i64: 16, 8>}, {pipeline_mode = #tpu.pipeline_mode<synchronous>, transform_indices = @transform_4, window_bounds = array<i64: 16, 1>}, {transform_indices = @transform_5, window_bounds = array<i64: 2, 16, 256>}]} {
    %c0 = arith.constant 0 : index
    %c0_0 = arith.constant 0 : index
    %c0_1 = arith.constant 0 : index
    %0 = vector.load %arg1[%c0, %c0_0, %c0_1] : memref<2x16x256xf32, #tpu.memory_space<vmem>>, vector<2x16x256xf32>
    %cst = arith.constant dense<0.000000e+00> : vector<2x16xf32>
    %1 = vector.multi_reduction <add>, %0, %cst [2] : vector<2x16x256xf32> to vector<2x16xf32>
    %2 = vector.shape_cast %1 : vector<2x16xf32> to vector<2x16x1xf32>
    %cst_2 = arith.constant 3.906250e-03 : f32
    %3 = vector.broadcast %cst_2 : f32 to vector<2x16x1xf32>
    %4 = arith.mulf %2, %3 : vector<2x16x1xf32>
    %c0_3 = arith.constant 0 : index
    %c0_4 = arith.constant 0 : index
    %5 = vector.load %arg2[%c0_3, %c0_4] : memref<16x8xf32, #tpu.memory_space<vmem>>, vector<16x8xf32>
    %6 = vector.shape_cast %5 : vector<16x8xf32> to vector<1x16x8xf32>
    %7 = vector.broadcast %6 : vector<1x16x8xf32> to vector<2x16x8xf32>
    %8 = vector.broadcast %4 : vector<2x16x1xf32> to vector<2x16x8xf32>
    %9 = arith.mulf %7, %8 : vector<2x16x8xf32>
    %cst_5 = arith.constant dense<0.000000e+00> : vector<2x8xf32>
    %10 = vector.multi_reduction <add>, %9, %cst_5 [1] : vector<2x16x8xf32> to vector<2x8xf32>
    %11 = vector.shape_cast %10 : vector<2x8xf32> to vector<2x1x8xf32>
    %c0_6 = arith.constant 0 : index
    %c0_7 = arith.constant 0 : index
    %12 = vector.load %arg3[%c0_6, %c0_7] : memref<1x8xf32, #tpu.memory_space<vmem>>, vector<1x8xf32>
    %13 = vector.shape_cast %12 : vector<1x8xf32> to vector<1x1x8xf32>
    %14 = vector.broadcast %13 : vector<1x1x8xf32> to vector<2x1x8xf32>
    %15 = arith.addf %11, %14 : vector<2x1x8xf32>
    %cst_8 = arith.constant 0.000000e+00 : f32
    %16 = vector.broadcast %cst_8 : f32 to vector<2x1x8xf32>
    %17 = arith.maximumf %15, %16 : vector<2x1x8xf32>
    %c0_9 = arith.constant 0 : index
    %c0_10 = arith.constant 0 : index
    %18 = vector.load %arg4[%c0_9, %c0_10] : memref<16x8xf32, #tpu.memory_space<vmem>>, vector<16x8xf32>
    %19 = vector.shape_cast %18 : vector<16x8xf32> to vector<1x16x8xf32>
    %20 = vector.broadcast %19 : vector<1x16x8xf32> to vector<2x16x8xf32>
    %21 = vector.broadcast %17 : vector<2x1x8xf32> to vector<2x16x8xf32>
    %22 = arith.mulf %20, %21 : vector<2x16x8xf32>
    %cst_11 = arith.constant dense<0.000000e+00> : vector<2x16xf32>
    %23 = vector.multi_reduction <add>, %22, %cst_11 [2] : vector<2x16x8xf32> to vector<2x16xf32>
    %24 = vector.shape_cast %23 : vector<2x16xf32> to vector<2x16x1xf32>
    %c0_12 = arith.constant 0 : index
    %c0_13 = arith.constant 0 : index
    %25 = vector.load %arg5[%c0_12, %c0_13] : memref<16x1xf32, #tpu.memory_space<vmem>>, vector<16x1xf32>
    %26 = vector.shape_cast %25 : vector<16x1xf32> to vector<1x16x1xf32>
    %27 = vector.broadcast %26 : vector<1x16x1xf32> to vector<2x16x1xf32>
    %28 = arith.addf %24, %27 : vector<2x16x1xf32>
    %29 = arith.negf %28 : vector<2x16x1xf32>
    %30 = math.exp %29 : vector<2x16x1xf32>
    %cst_14 = arith.constant 1.000000e+00 : f32
    %31 = vector.broadcast %cst_14 : f32 to vector<2x16x1xf32>
    %32 = arith.addf %31, %30 : vector<2x16x1xf32>
    %33 = arith.divf %31, %32 : vector<2x16x1xf32>
    %34 = vector.broadcast %33 : vector<2x16x1xf32> to vector<2x16x256xf32>
    %35 = arith.mulf %0, %34 : vector<2x16x256xf32>
    %c0_15 = arith.constant 0 : index
    %c0_16 = arith.constant 0 : index
    %c0_17 = arith.constant 0 : index
    %36 = vector.load %arg6[%c0_15, %c0_16, %c0_17] : memref<2x16x256xf32, #tpu.memory_space<vmem>>, vector<2x16x256xf32>
    tpu.vector_store %arg6[%c0_15, %c0_16, %c0_17], %35 {strides = array<i32>} : memref<2x16x256xf32, #tpu.memory_space<vmem>>, vector<2x16x256xf32>,
    return
  }
  func.func @transform_0(%arg0: i32) -> (i32, i32, i32) {
    %c0_i32 = arith.constant 0 : i32
    %c0_i32_0 = arith.constant 0 : i32
    %c0_i32_1 = arith.constant 0 : i32
    return %arg0, %c0_i32, %c0_i32_0 : i32, i32, i32
  }
  func.func @transform_1(%arg0: i32) -> (i32, i32) {
    %c0_i32 = arith.constant 0 : i32
    %c0_i32_0 = arith.constant 0 : i32
    %c0_i32_1 = arith.constant 0 : i32
    return %c0_i32, %c0_i32_0 : i32, i32
  }
  func.func @transform_2(%arg0: i32) -> (i32, i32) {
    %c0_i32 = arith.constant 0 : i32
    %c0_i32_0 = arith.constant 0 : i32
    %c0_i32_1 = arith.constant 0 : i32
    return %c0_i32, %c0_i32_0 : i32, i32
  }
  func.func @transform_3(%arg0: i32) -> (i32, i32) {
    %c0_i32 = arith.constant 0 : i32
    %c0_i32_0 = arith.constant 0 : i32
    %c0_i32_1 = arith.constant 0 : i32
    return %c0_i32, %c0_i32_0 : i32, i32
  }
  func.func @transform_4(%arg0: i32) -> (i32, i32) {
    %c0_i32 = arith.constant 0 : i32
    %c0_i32_0 = arith.constant 0 : i32
    %c0_i32_1 = arith.constant 0 : i32
    return %c0_i32, %c0_i32_0 : i32, i32
  }
  func.func @transform_5(%arg0: i32) -> (i32, i32, i32) {
    %c0_i32 = arith.constant 0 : i32
    %c0_i32_0 = arith.constant 0 : i32
    %c0_i32_1 = arith.constant 0 : i32
    return %arg0, %c0_i32, %c0_i32_0 : i32, i32, i32
  }
}

</mosaic_0001>

<bundles_post_ra>
// kernel: tpu_custom_call.1
= control target key start
LH: loop header
LB: loop body
LE: loop exit
PB: predicated region body
PF: predicated region fallthrough
CT: control target
= control target key end

     0   :  { %10 = vsyncpa [#allocation3], 0  ;;  %s412_s0 = inlined_call_operand.vmem [shape: f32[2,16,256], index: 0, kind: input, shape index: {}]   ;;  %s413_s1 = inlined_call_operand.vmem [shape: f32[16,8], index: 1, kind: input, shape index: {}]   ;;  %s414_s2 = inlined_call_operand.hbm [shape: f32[1,8], index: 2, kind: input, shape index: {}]   ;;  %s415_s3 = inlined_call_operand.vmem [shape: f32[16,8], index: 3, kind: input, shape index: {}]   ;;  %s416_s4 = inlined_call_operand.vmem [shape: f32[16,1], index: 4, kind: input, shape index: {}]   ;;  %s417_s5 = inlined_call_operand.hbm [shape: f32[2,16,256], index: 5, kind: output, shape index: {}]  }
   0x1   :  { %11 = vsyncpa [#allocation4], 0  ;;  %s271_s18 = smov [#allocation2]   ;;  %s223_s22 = scalar_lea.hbm %s414_s2, 16 }
   0x2   :  { %s22_s19 = sshll.u32 %s271_s18, 4  ;;  %p224_p0 = scmp.ne.s32.totalorder %s414_s2, %s223_s22  ;;  %s23_s19 = int_to_ptr.vmem [resolvable:$true] %s22_s19 }
   0x3   :  { %p227_p1 = scmp.lt.u32.totalorder %s223_s22, %s414_s2 }
   0x5   :  { %p229_p2 = pnand %p227_p1, %p224_p0 }
   0x7   :  { %232 = shalt.err (!%p229_p2)
}
   0x8   :  { %s233_s27 = scalar_lea.vmem %s23_s19, 16  ;;  %s237_s28 = scalar_lea.vmem %s23_s19, 32 }
   0x9   :  { %p234_p3 = scmp.ne.s32.totalorder %s23_s19, %s233_s27  ;;  %p238_p4 = scmp.lt.s32.totalorder %s23_s19, %s23_s19 }
   0xa   :  { %p239_p5 = scmp.lt.s32.totalorder %s237_s28, %s233_s27 }
   0xc   :  { %p240_p6 = por %p239_p5, %p238_p4 }
   0xe   :  { %p241_p7 = pnand %p240_p6, %p234_p3 }
  0x10   :  { %244 = shalt.err (!%p241_p7)
}
  0x11   :  { %25 = dma.hbm_to_vmem [thread:$0]  %s414_s2, 16, %s23_s19, [#allocation3]  }
  0x12   :  { %267 = dma.done.wait [#allocation3], 16  }
  0x13   :  { %268 = vsyncadd [#allocation3], 4294967280  ;;  %v321_v0 = vld [vmem:[%s412_s0 + $0x20] sm:$0xff]  ;;  %v326_v1 = vld [vmem:[%s412_s0 + $0x28] sm:$0xff]  ;;  %vm63_vm0 = vcmask 64512   ;;  %v89_v38 = vlaneseq }
  0x14   :  { %v331_v2 = vld [vmem:[%s412_s0] sm:$0xff]  ;;  %v47_v3 = vadd.f32 %v326_v1, %v321_v0  ;;  %v338_v4 = vld [vmem:[%s412_s0 + $0x8] sm:$0xff]  ;;  %v343_v5 = vld [vmem:[%s412_s0 + $0x30] sm:$0xff] }
  0x15   :  { %v348_v6 = vld [vmem:[%s412_s0 + $0x38] sm:$0xff]  ;;  %v41_v7 = vadd.f32 %v338_v4, %v331_v2  ;;  %v355_v8 = vld [vmem:[%s412_s0 + $0x10] sm:$0xff]  ;;  %v57_v15 = vld [vmem:[%s413_s1] sm:$0xff]  ;;  %v90_v44 = vshrl.u32 %v89_v38, 7 }
  0x16   :  { %v360_v9 = vld [vmem:[%s412_s0 + $0x18] sm:$0xff]  ;;  %48 = vadd.xlane.f32.xlu1 %v47_v3  ;;  %v50_v10 = vadd.f32 %v348_v6, %v343_v5  ;;  %v58_v18 = vld [vmem:[%s413_s1 + $0x8] sm:$0xff]  ;;  %v82_v43 = vld [vmem:[#allocation2] sm:$0x1]  ;;  %v272_v3 = vmov 0  }
  0x17   :  { %42 = vadd.xlane.f32.xlu0 %v41_v7  ;;  %v44_v11 = vadd.f32 %v360_v9, %v355_v8  ;;  %v91_v49 = vsub.s32 0, %v90_v44  ;;  %v88_v52 = vld [vmem:[%s415_s3 + $0x8] sm:$0xff]  ;;  %v87_v53 = vld [vmem:[%s415_s3] sm:$0xff]  ;;  %206 = vset.pattern.permute.xlu1 %v272_v3 }
  0x18   :  { %205 = vset.pattern.permute.xlu0 %v272_v3  ;;  %v114_v7 = vld [vmem:[%s416_s4 + $0x8] sm:$0xff] }
  0x1a   :  { %51 = vadd.xlane.f32.xlu1 %v50_v10  ;;  %v113_v10 = vld [vmem:[%s416_s4] sm:$0xff]  ;;  %s273_s4 = smov [#allocation5]  }
  0x1b   :  { %45 = vadd.xlane.f32.xlu0 %v44_v11  ;;  %s184_s30 = sshll.u32 %s273_s4, 4  ;;  %s185_s30 = int_to_ptr.vmem [resolvable:$true] %s184_s30 }
  0x1c   :  { %s245_s6 = scalar_lea.vmem %s185_s30, 1024  ;;  %p250_p9 = scmp.lt.s32.totalorder %s185_s30, %s185_s30 }
  0x1d   :  { %p246_p8 = scmp.ne.s32.totalorder %s185_s30, %s245_s6  ;;  %p251_p10 = scmp.lt.s32.totalorder %s245_s6, %s245_s6 }
  0x1f   :  { %p252_p11 = por %p251_p10, %p250_p9 }
  0x21   :  { %p253_p12 = pnand %p252_p11, %p246_p8 }
  0xa3   :  { %v49_v12 = vpop.xlane.xlu1 %48 }
  0xa4   :  { %v55_v13 = vmul.f32 0.00390625, %v49_v12  ;;  %v43_v14 = vpop.xlane.xlu0 %42 }
  0xa5   :  { %v53_v16 = vmul.f32 0.00390625, %v43_v14 }
  0xa6   :  { %v61_v17 = vmul.f32 %v57_v15, %v55_v13 }
  0xa7   :  { %v52_v19 = vpop.xlane.xlu1 %51  ;;  %v59_v22 = vmul.f32 %v57_v15, %v53_v16 }
  0xa8   :  { %v56_v20 = vmul.f32 0.00390625, %v52_v19  ;;  %v46_v21 = vpop.xlane.xlu0 %45  ;;  %v73_v24 = vsel %vm63_vm0, %v61_v17, 0.0 }
  0xa9   :  { %v54_v23 = vmul.f32 0.00390625, %v46_v21  ;;  %v64_v28 = vsel %vm63_vm0, %v59_v22, 0.0 }
  0xaa   :  { %v62_v25 = vmul.f32 %v58_v18, %v56_v20 }
  0xab   :  { %v60_v26 = vmul.f32 %v58_v18, %v54_v23 }
  0xac   :  { %v74_v27 = vsel %vm63_vm0, %v62_v25, 0.0 }
  0xad   :  { %v75_v29 = vadd.f32 %v74_v27, %v73_v24  ;;  %v65_v30 = vsel %vm63_vm0, %v60_v26, 0.0 }
  0xae   :  { %v66_v31 = vadd.f32 %v65_v30, %v64_v28 }
  0xaf   :  { %v76_v32 = vrot.slane %v75_v29, 4 }
  0xb0   :  { %v67_v33 = vrot.slane %v66_v31, 4 }
  0xb1   :  { %v77_v34 = vadd.f32 %v76_v32, %v75_v29 }
  0xb2   :  { %v68_v35 = vadd.f32 %v67_v33, %v66_v31 }
  0xb3   :  { %v78_v36 = vrot.slane %v77_v34, 2 }
  0xb4   :  { %v69_v37 = vrot.slane %v68_v35, 2 }
  0xb5   :  { %v79_v39 = vadd.f32 %v78_v36, %v77_v34 }
  0xb6   :  { %v70_v40 = vadd.f32 %v69_v37, %v68_v35 }
  0xb7   :  { %v80_v41 = vrot.slane %v79_v39, 1 }
  0xb8   :  { %v71_v42 = vrot.slane %v70_v40, 1 }
  0xb9   :  { %v81_v45 = vadd.f32 %v80_v41, %v79_v39 }
  0xba   :  { %v72_v46 = vadd.f32 %v71_v42, %v70_v40 }
  0xbb   :  { %v84_v47 = vadd.f32 %v82_v43, %v81_v45 }
  0xbc   :  { %v83_v48 = vadd.f32 %v82_v43, %v72_v46 }
  0xbd   :  { %v86_v50 = vmax.f32 %v84_v47, 0.0 }
  0xbe   :  { %v85_v51 = vmax.f32 %v83_v48, 0.0 }
  0xbf   :  { %v96_v55 = vrot.slane %v86_v50, %v91_v49 }
  0xc0   :  { %v92_v54 = vrot.slane %v85_v51, %v91_v49 }
  0xc1   :  { %v100_v60 = vmul.f32 %v96_v55, %v88_v52  ;;  %v99_v61 = vmul.f32 %v96_v55, %v87_v53 }
  0xc2   :  { %v98_v56 = vmul.f32 %v92_v54, %v88_v52  ;;  %v97_v57 = vmul.f32 %v92_v54, %v87_v53 }
  0xc3   :  { %v110_v62 = vsel %vm63_vm0, %v100_v60, 0.0  ;;  %v107_v63 = vsel %vm63_vm0, %v99_v61, 0.0 }
  0xc4   :  { %v104_v58 = vsel %vm63_vm0, %v98_v56, 0.0  ;;  %v101_v59 = vsel %vm63_vm0, %v97_v57, 0.0 }
  0xc5   :  { %105 = vadd.xlane.f32.xlu1 %v104_v58  ;;  %102 = vadd.xlane.f32.xlu0 %v101_v59 }
  0xc9   :  { %111 = vadd.xlane.f32.xlu1 %v110_v62  ;;  %108 = vadd.xlane.f32.xlu0 %v107_v63 }
 0x152   :  { %v106_v11 = vpop.xlane.xlu1 %105  ;;  %v103_v12 = vpop.xlane.xlu0 %102 }
 0x153   :  { %v116_v13 = vadd.f32 %v114_v7, %v106_v11  ;;  %v115_v14 = vadd.f32 %v113_v10, %v103_v12 }
 0x155   :  { %v197_v15 = vmul.f32 -1.442695, %v116_v13  ;;  %v196_v16 = vmul.f32 -1.442695, %v115_v14 }
 0x156   :  { %v112_v17 = vpop.xlane.xlu1 %111  ;;  %v109_v18 = vpop.xlane.xlu0 %108 }
 0x157   :  { %207 = vpow2.f32 %v197_v15  ;;  %v118_v19 = vadd.f32 %v114_v7, %v112_v17  ;;  %v117_v20 = vadd.f32 %v113_v10, %v109_v18 }
 0x158   :  { %209 = vpow2.f32 %v196_v16 }
 0x159   :  { %v199_v21 = vmul.f32 -1.442695, %v118_v19  ;;  %v198_v22 = vmul.f32 -1.442695, %v117_v20 }
 0x15b   :  { %211 = vpow2.f32 %v199_v21 }
 0x15c   :  { %213 = vpow2.f32 %v198_v22 }
 0x161   :  { %v208_v23 = vpop.eup %207 }
 0x162   :  { %v210_v24 = vpop.eup %209  ;;  %v132_v25 = vadd.f32 1.0, %v208_v23 }
 0x163   :  { %v131_v26 = vadd.f32 1.0, %v210_v24 }
 0x164   :  { %215 = vrcp.f32 %v132_v25 }
 0x165   :  { %v212_v27 = vpop.eup %211  ;;  %217 = vrcp.f32 %v131_v26 }
 0x166   :  { %v214_v28 = vpop.eup %213  ;;  %v134_v30 = vadd.f32 1.0, %v212_v27 }
 0x167   :  { %v133_v29 = vadd.f32 1.0, %v214_v28 }
 0x169   :  { %219 = vrcp.f32 %v133_v29 }
 0x16a   :  { %221 = vrcp.f32 %v134_v30 }
 0x16e   :  { %v216_v31 = vpop.eup %215 }
 0x16f   :  { %v218_v32 = vpop.eup %217  ;;  %150 = vperm.xlu1 %206, %v216_v31  }
 0x170   :  { %145 = vperm.xlu0 %205, %v218_v32  }
 0x173   :  { %v220_v33 = vpop.eup %219 }
 0x174   :  { %155 = vperm.xlu1 %206, %v220_v33   ;;  %v222_v34 = vpop.eup %221 }
 0x178   :  { %160 = vperm.xlu1 %206, %v222_v34  }
 0x1ee   :  { %v151_v35 = vpop.permute.xlu1 %150 }
 0x1ef   :  { %v165_v36 = vmul.f32 %v151_v35, %v355_v8  ;;  %v166_v37 = vmul.f32 %v151_v35, %v360_v9  ;;  %v146_v38 = vpop.permute.xlu0 %145 }
 0x1f0   :  { %v163_v39 = vmul.f32 %v146_v38, %v331_v2  ;;  %v164_v40 = vmul.f32 %v146_v38, %v338_v4 }
 0x1f1   :  { %173 = vst [vmem:[#allocation5 + $0x10] sm:$0xff] %v165_v36  ;;  %174 = vst [vmem:[#allocation5 + $0x18] sm:$0xff] %v166_v37 }
 0x1f2   :  { %171 = vst [vmem:[#allocation5] sm:$0xff] %v163_v39  ;;  %172 = vst [vmem:[#allocation5 + $0x8] sm:$0xff] %v164_v40 }
 0x1f3   :  { %v156_v41 = vpop.permute.xlu1 %155 }
 0x1f4   :  { %v167_v42 = vmul.f32 %v156_v41, %v321_v0  ;;  %v168_v43 = vmul.f32 %v156_v41, %v326_v1 }
 0x1f6   :  { %175 = vst [vmem:[#allocation5 + $0x20] sm:$0xff] %v167_v42  ;;  %176 = vst [vmem:[#allocation5 + $0x28] sm:$0xff] %v168_v43 }
 0x1f7   :  { %v161_v8 = vpop.permute.xlu1 %160 }
 0x1f8   :  { %v169_v9 = vmul.f32 %v161_v8, %v343_v5  ;;  %v170_v2 = vmul.f32 %v161_v8, %v348_v6 }
 0x1fa   :  { %177 = vst [vmem:[#allocation5 + $0x30] sm:$0xff] %v169_v9  ;;  %178 = vst [vmem:[#allocation5 + $0x38] sm:$0xff] %v170_v2 }
 0x1fb   :  { %256 = shalt.err (!%p253_p12)
}
 0x1fc   :  { %s257_s9 = scalar_lea.hbm %s417_s5, 1024 }
 0x1fd   :  { %p258_p13 = scmp.ne.s32.totalorder %s417_s5, %s257_s9  ;;  %p261_p0 = scmp.lt.u32.totalorder %s257_s9, %s417_s5 }
 0x1ff   :  { %p263_p1 = pnand %p261_p0, %p258_p13 }
 0x201   :  { %266 = shalt.err (!%p263_p1)
}
 0x202   :  { %s274_s13 = smov 256   ;;  %s275_s14 = smov 16  }
 0x203   :  { %190 = dma.vmem_to_hbm [thread:$0]  %s185_s30, 1024, %s417_s5, [#allocation4], %s274_s13, %s274_s13, %s275_s14  }
 0x204   :  { %269 = dma.done.wait [#allocation4], 1024  }
 0x205   :  { %270 = vsyncadd [#allocation4], 4294966272 }
 0x206   :  { %194 = vsyncpa [#allocation3], 1 }
 0x207   :  { %195 = vsyncpa [#allocation4], 1 }

</bundles_post_ra>
